<compile_context>
chip_gen: v7x
topology: tpu7x:2x2x1
jax: 0.10.0
libtpu: 0.0.40
codegen_flags: <defaults>
</compile_context>

<pallas_src>
import functools

import jax
import jax.numpy as jnp
from jax.experimental import pallas as pl
from jax.experimental.pallas import tpu as pltpu


def _bond_encoder_kernel(ea_ref, table_ref, out_ref, *, pack, feat_dims, t_comb):
    # ea_ref   : (tile_rows, pack*F) int32 raw edge attributes (pack edges/row).
    # table_ref: (pack*t_comb, pack*D) float32 block-diagonal fused table.
    # out_ref  : (tile_rows, pack*D) -- `pack` edges per 128-lane output row.
    ea = ea_ref[...]
    rows = ea.shape[0]
    twide = table_ref.shape[0]
    nfeat = len(feat_dims)

    # Mixed-radix strides: combined = sum_i a_i * prod(dims[i+1:]).
    strides = [1] * nfeat
    for i in range(nfeat - 2, -1, -1):
        strides[i] = strides[i + 1] * feat_dims[i + 1]

    iota = jax.lax.broadcasted_iota(jnp.int32, (rows, twide), 1)

    # Build the {0,1} multi-hot matrix.  Each packed slot's index range in the
    # block-diagonal table is disjoint, so OR of one-hot masks == multi-hot.
    hit = None
    for slot in range(pack):                      # static tiny loop (pack cols)
        cidx = ea[:, slot * nfeat:slot * nfeat + 1] * strides[0]
        for i in range(1, nfeat):                 # in-kernel index combine
            cidx = cidx + ea[:, slot * nfeat + i:slot * nfeat + i + 1] * strides[i]
        cidx = cidx + slot * t_comb               # block-diagonal slot shift
        h = cidx == iota
        hit = h if hit is None else jnp.logical_or(hit, h)

    # One MXU matmul == gather + sum over all features of all packed edges.
    out_ref[...] = jnp.dot(hit.astype(jnp.float32), table_ref[...],
                           preferred_element_type=jnp.float32
                           ).astype(out_ref.dtype)


def ogb_bond_encoder(edge_attr, tables, *, tile_e=32768, out_dtype=jnp.float32):
    """edge_attr: [E, F] int; tables: list of [dim_i, D] float32 arrays."""
    E, F = edge_attr.shape
    D = int(tables[0].shape[1])
    dims = [int(t.shape[0]) for t in tables]
    t_comb = 1
    for d in dims:
        t_comb *= d

    # ---- glue (plain JAX, outside the kernel) ------------------------------
    # Fused table over the cartesian product of all feature values (tiny for
    # bond features): table_c[mixed_radix(a0..aF-1)] = sum_i Emb_i[a_i].
    table_c = None
    for i, t in enumerate(tables):
        shape = [1] * F + [D]
        shape[i] = dims[i]
        tt = t.astype(jnp.float32).reshape(shape)
        table_c = tt if table_c is None else table_c + tt
    table_c = table_c.reshape(t_comb, D)

    # Lane-dense packing: `pack` edges per 128-lane output row.
    pack = 128 // D if (0 < D <= 128 and 128 % D == 0) else 1
    if pack > 1:
        table_wide = jnp.kron(jnp.eye(pack, dtype=jnp.float32), table_c)
    else:
        table_wide = table_c
    twide, dwide = int(table_wide.shape[0]), int(table_wide.shape[1])

    # Tile sizing: tile_rows must be a multiple of 8 sublanes.  Keep >= 8 grid
    # steps for large E (>= 4 steps per TensorCore on v7x) so double-buffering
    # overlaps; small E collapses to one or two small tiles.
    align = pack * 8
    tile_e = max(align, (tile_e // align) * align)
    target_steps = 8
    cap = pl.cdiv(E, target_steps * align) * align
    tile_e = min(tile_e, max(align, cap))
    E_pad = pl.cdiv(E, tile_e) * tile_e
    grid = E_pad // tile_e
    tile_rows = tile_e // pack
    rows_total = E_pad // pack

    # Raw int32 indices; pad only if needed; packed view is a free reshape.
    ea = edge_attr.astype(jnp.int32)
    if E_pad != E:
        ea = jnp.pad(ea, ((0, E_pad - E), (0, 0)))
    ea_packed = ea.reshape(rows_total, pack * F)

    cost = pl.CostEstimate(
        flops=2 * rows_total * twide * dwide,
        transcendentals=0,
        bytes_accessed=rows_total * pack * F * 4        # index reads
                       + rows_total * dwide * jnp.dtype(out_dtype).itemsize
                       + twide * dwide * 4)             # table (resident)

    kernel = functools.partial(_bond_encoder_kernel,
                               pack=pack, feat_dims=tuple(dims), t_comb=t_comb)

    out_packed = pl.pallas_call(
        kernel,
        out_shape=jax.ShapeDtypeStruct((rows_total, dwide), out_dtype),
        grid_spec=pltpu.PrefetchScalarGridSpec(
            num_scalar_prefetch=0,
            grid=(grid,),
            in_specs=[
                pl.BlockSpec((tile_rows, pack * F), lambda i: (i, 0)),  # idx
                pl.BlockSpec((twide, dwide), lambda i: (0, 0)),         # table
            ],
            out_specs=pl.BlockSpec((tile_rows, dwide), lambda i: (i, 0)),
        ),
        compiler_params=pltpu.CompilerParams(
            dimension_semantics=("parallel",),
            vmem_limit_bytes=48 * 1024 * 1024),
        cost_estimate=cost,
    )(ea_packed, table_wide)

    # Packed rows are the same row-major memory as [E_pad, D].
    out = out_packed.reshape(E_pad, D)
    if E_pad != E:
        out = out[:E]   # only materialize a sliced copy when padding existed
    return out


if __name__ == "__main__":
    key = jax.random.PRNGKey(0)

    emb_dim = 32
    full_bond_feature_dims = [5, 6, 2]   # OGB-style bond feature cardinalities
    num_edges = 64

    # Deterministic xavier_uniform init for each embedding table.
    tables = []
    for dim in full_bond_feature_dims:
        key, sub = jax.random.split(key)
        bound = (6.0 / (dim + emb_dim)) ** 0.5
        tables.append(jax.random.uniform(sub, (dim, emb_dim),
                                         jnp.float32, -bound, bound))

    # Deterministic categorical edge attributes.
    cols = []
    for dim in full_bond_feature_dims:
        key, sub = jax.random.split(key)
        cols.append(jax.random.randint(sub, (num_edges,), 0, dim, jnp.int32))
    edge_attr = jnp.stack(cols, axis=1)  # [E, F]

    out = ogb_bond_encoder(edge_attr, tables)
    out = jax.block_until_ready(out)

    # Pure-JAX reference (gather + sum).
    ref = sum(tables[i][edge_attr[:, i]] for i in range(len(tables)))
    assert out.shape == (num_edges, emb_dim)
    assert jnp.allclose(out, ref, atol=1e-5), "mismatch vs reference"

    print("KERNEL_OK")
</pallas_src>

<mosaic_0001>
module attributes {stable_mosaic.version = 11 : i64} {
  func.func @_bond_encoder_kernel(%arg0: i32, %arg1: memref<8x12xi32, #tpu.memory_space<vmem>>, %arg2: memref<240x128xf32, #tpu.memory_space<vmem>>, %arg3: memref<8x128xf32, #tpu.memory_space<vmem>>) attributes {dimension_semantics = [#tpu.dimension_semantics<parallel>], iteration_bounds = array<i64: 2>, scalar_prefetch = 0 : i64, scratch_operands = 0 : i64, tpu.core_type = #tpu.core_type<tc>, window_params = [{transform_indices = @transform_0, window_bounds = array<i64: 8, 12>}, {pipeline_mode = #tpu.pipeline_mode<synchronous>, transform_indices = @transform_1, window_bounds = array<i64: 240, 128>}, {transform_indices = @transform_2, window_bounds = array<i64: 8, 128>}]} {
    %c0 = arith.constant 0 : index
    %c0_0 = arith.constant 0 : index
    %0 = vector.load %arg1[%c0, %c0_0] : memref<8x12xi32, #tpu.memory_space<vmem>>, vector<8x12xi32>
    %1 = tpu.iota {dimensions = array<i32: 1>} : vector<8x240xi32>
    %2 = vector.extract_strided_slice %0 {offsets = [0, 0], sizes = [8, 1], strides = [1, 1]} : vector<8x12xi32> to vector<8x1xi32>
    %c12_i32 = arith.constant 12 : i32
    %3 = vector.broadcast %c12_i32 : i32 to vector<8x1xi32>
    %4 = arith.muli %2, %3 : vector<8x1xi32>
    %5 = vector.extract_strided_slice %0 {offsets = [0, 1], sizes = [8, 1], strides = [1, 1]} : vector<8x12xi32> to vector<8x1xi32>
    %c2_i32 = arith.constant 2 : i32
    %6 = vector.broadcast %c2_i32 : i32 to vector<8x1xi32>
    %7 = arith.muli %5, %6 : vector<8x1xi32>
    %8 = arith.addi %4, %7 : vector<8x1xi32>
    %9 = vector.extract_strided_slice %0 {offsets = [0, 2], sizes = [8, 1], strides = [1, 1]} : vector<8x12xi32> to vector<8x1xi32>
    %c1_i32 = arith.constant 1 : i32
    %10 = vector.broadcast %c1_i32 : i32 to vector<8x1xi32>
    %11 = arith.muli %9, %10 : vector<8x1xi32>
    %12 = arith.addi %8, %11 : vector<8x1xi32>
    %c0_i32 = arith.constant 0 : i32
    %13 = vector.broadcast %c0_i32 : i32 to vector<8x1xi32>
    %14 = arith.addi %12, %13 : vector<8x1xi32>
    %15 = vector.broadcast %14 : vector<8x1xi32> to vector<8x240xi32>
    %16 = arith.cmpi eq, %15, %1 : vector<8x240xi32>
    %17 = vector.extract_strided_slice %0 {offsets = [0, 3], sizes = [8, 1], strides = [1, 1]} : vector<8x12xi32> to vector<8x1xi32>
    %c12_i32_1 = arith.constant 12 : i32
    %18 = vector.broadcast %c12_i32_1 : i32 to vector<8x1xi32>
    %19 = arith.muli %17, %18 : vector<8x1xi32>
    %20 = vector.extract_strided_slice %0 {offsets = [0, 4], sizes = [8, 1], strides = [1, 1]} : vector<8x12xi32> to vector<8x1xi32>
    %c2_i32_2 = arith.constant 2 : i32
    %21 = vector.broadcast %c2_i32_2 : i32 to vector<8x1xi32>
    %22 = arith.muli %20, %21 : vector<8x1xi32>
    %23 = arith.addi %19, %22 : vector<8x1xi32>
    %24 = vector.extract_strided_slice %0 {offsets = [0, 5], sizes = [8, 1], strides = [1, 1]} : vector<8x12xi32> to vector<8x1xi32>
    %c1_i32_3 = arith.constant 1 : i32
    %25 = vector.broadcast %c1_i32_3 : i32 to vector<8x1xi32>
    %26 = arith.muli %24, %25 : vector<8x1xi32>
    %27 = arith.addi %23, %26 : vector<8x1xi32>
    %c60_i32 = arith.constant 60 : i32
    %28 = vector.broadcast %c60_i32 : i32 to vector<8x1xi32>
    %29 = arith.addi %27, %28 : vector<8x1xi32>
    %30 = vector.broadcast %29 : vector<8x1xi32> to vector<8x240xi32>
    %31 = arith.cmpi eq, %30, %1 : vector<8x240xi32>
    %32 = arith.ori %16, %31 : vector<8x240xi1>
    %33 = vector.extract_strided_slice %0 {offsets = [0, 6], sizes = [8, 1], strides = [1, 1]} : vector<8x12xi32> to vector<8x1xi32>
    %c12_i32_4 = arith.constant 12 : i32
    %34 = vector.broadcast %c12_i32_4 : i32 to vector<8x1xi32>
    %35 = arith.muli %33, %34 : vector<8x1xi32>
    %36 = vector.extract_strided_slice %0 {offsets = [0, 7], sizes = [8, 1], strides = [1, 1]} : vector<8x12xi32> to vector<8x1xi32>
    %c2_i32_5 = arith.constant 2 : i32
    %37 = vector.broadcast %c2_i32_5 : i32 to vector<8x1xi32>
    %38 = arith.muli %36, %37 : vector<8x1xi32>
    %39 = arith.addi %35, %38 : vector<8x1xi32>
    %40 = vector.extract_strided_slice %0 {offsets = [0, 8], sizes = [8, 1], strides = [1, 1]} : vector<8x12xi32> to vector<8x1xi32>
    %c1_i32_6 = arith.constant 1 : i32
    %41 = vector.broadcast %c1_i32_6 : i32 to vector<8x1xi32>
    %42 = arith.muli %40, %41 : vector<8x1xi32>
    %43 = arith.addi %39, %42 : vector<8x1xi32>
    %c120_i32 = arith.constant 120 : i32
    %44 = vector.broadcast %c120_i32 : i32 to vector<8x1xi32>
    %45 = arith.addi %43, %44 : vector<8x1xi32>
    %46 = vector.broadcast %45 : vector<8x1xi32> to vector<8x240xi32>
    %47 = arith.cmpi eq, %46, %1 : vector<8x240xi32>
    %48 = arith.ori %32, %47 : vector<8x240xi1>
    %49 = vector.extract_strided_slice %0 {offsets = [0, 9], sizes = [8, 1], strides = [1, 1]} : vector<8x12xi32> to vector<8x1xi32>
    %c12_i32_7 = arith.constant 12 : i32
    %50 = vector.broadcast %c12_i32_7 : i32 to vector<8x1xi32>
    %51 = arith.muli %49, %50 : vector<8x1xi32>
    %52 = vector.extract_strided_slice %0 {offsets = [0, 10], sizes = [8, 1], strides = [1, 1]} : vector<8x12xi32> to vector<8x1xi32>
    %c2_i32_8 = arith.constant 2 : i32
    %53 = vector.broadcast %c2_i32_8 : i32 to vector<8x1xi32>
    %54 = arith.muli %52, %53 : vector<8x1xi32>
    %55 = arith.addi %51, %54 : vector<8x1xi32>
    %56 = vector.extract_strided_slice %0 {offsets = [0, 11], sizes = [8, 1], strides = [1, 1]} : vector<8x12xi32> to vector<8x1xi32>
    %c1_i32_9 = arith.constant 1 : i32
    %57 = vector.broadcast %c1_i32_9 : i32 to vector<8x1xi32>
    %58 = arith.muli %56, %57 : vector<8x1xi32>
    %59 = arith.addi %55, %58 : vector<8x1xi32>
    %c180_i32 = arith.constant 180 : i32
    %60 = vector.broadcast %c180_i32 : i32 to vector<8x1xi32>
    %61 = arith.addi %59, %60 : vector<8x1xi32>
    %62 = vector.broadcast %61 : vector<8x1xi32> to vector<8x240xi32>
    %63 = arith.cmpi eq, %62, %1 : vector<8x240xi32>
    %64 = arith.ori %48, %63 : vector<8x240xi1>
    %65 = arith.extui %64 : vector<8x240xi1> to vector<8x240xi32>
    %66 = arith.sitofp %65 : vector<8x240xi32> to vector<8x240xf32>
    %c0_10 = arith.constant 0 : index
    %c0_11 = arith.constant 0 : index
    %67 = vector.load %arg2[%c0_10, %c0_11] : memref<240x128xf32, #tpu.memory_space<vmem>>, vector<240x128xf32>
    %cst = arith.constant dense<0.000000e+00> : vector<8x128xf32>
    %68 = tpu.matmul %66, %67, %cst {dimension_numbers = #tpu.dot_dimension_numbers<[1], [0], [0], [1], [0, 0, 1, 1], [], []>} : vector<8x240xf32>, vector<240x128xf32>, vector<8x128xf32> -> vector<8x128xf32>
    %c0_12 = arith.constant 0 : index
    %c0_13 = arith.constant 0 : index
    %69 = vector.load %arg3[%c0_12, %c0_13] : memref<8x128xf32, #tpu.memory_space<vmem>>, vector<8x128xf32>
    tpu.vector_store %arg3[%c0_12, %c0_13], %68 {strides = array<i32>} : memref<8x128xf32, #tpu.memory_space<vmem>>, vector<8x128xf32>,
    return
  }
  func.func @transform_0(%arg0: i32) -> (i32, i32) {
    %c0_i32 = arith.constant 0 : i32
    %c0_i32_0 = arith.constant 0 : i32
    return %arg0, %c0_i32 : i32, i32
  }
  func.func @transform_1(%arg0: i32) -> (i32, i32) {
    %c0_i32 = arith.constant 0 : i32
    %c0_i32_0 = arith.constant 0 : i32
    %c0_i32_1 = arith.constant 0 : i32
    return %c0_i32, %c0_i32_0 : i32, i32
  }
  func.func @transform_2(%arg0: i32) -> (i32, i32) {
    %c0_i32 = arith.constant 0 : i32
    %c0_i32_0 = arith.constant 0 : i32
    return %arg0, %c0_i32 : i32, i32
  }
}

</mosaic_0001>

<bundles_post_ra>
// kernel: tpu_custom_call.1
= control target key start
LH: loop header
LB: loop body
LE: loop exit
PB: predicated region body
PF: predicated region fallthrough
CT: control target
= control target key end

     0   :  { %7 = vsyncpa [#allocation3], 0  ;;  %s933_s0 = inlined_call_operand.hbm [shape: s32[16,12], index: 0, kind: input, shape index: {}]   ;;  %s934_s1 = inlined_call_operand.hbm [shape: f32[240,128], index: 1, kind: input, shape index: {}]   ;;  %s935_s2 = inlined_call_operand.hbm [shape: f32[16,128], index: 2, kind: output, shape index: {}]  }
   0x1   :  { %9 = vsyncpa [#allocation3 + $0x1], 0 }
   0x2   :  { %10 = vsyncpa [#allocation6], 0 }
   0x3   :  { %11 = vsyncpa [#allocation4], 0 }
   0x4   :  { %13 = vsyncpa [#allocation4 + $0x1], 0  ;;  %s713_s9 = smov 0   ;;  %s715_s10 = smov 0  }
   0x5   :  { %s717_s11 = smov 0   ;;  %s719_s12 = smov 0  }
   0x6 LB: > { %s734_s13 = sadd.s32 4294967295, %s682_s12   ;;  %s418_s14 = sadd.s32 4294967294, %s682_s12   ;;  %s682_s12 = sphi %s719_s12, %s955_s12   ;;  %s678_s11 = sphi %s717_s11, %s954_s11   ;;  %s674_s10 = sphi %s715_s10, %s953_s10   ;;  %s670_s9 = sphi %s713_s9, %s952_s9  }
   0x7   : > { %p39_p0 = scmp.ne.s32.totalorder %s674_s10, %s670_s9  ;;  %p936_p1 = scmp.eq.s32.totalorder %s734_s13, 0 }
   0x8   : > { %p90_p3 = scmp.eq.s32.totalorder %s418_s14, 1  ;;  %p419_p5 = scmp.ge.s32.totalorder %s682_s12, 1 }
   0x9   : > { %p743_p4 = por %p936_p1, %p39_p0  ;;  %p97_p7 = scmp.lt.s32.totalorder %s682_s12, 3 }
   0xa   : > { %p748_p6 = por %p90_p3, %p39_p0  ;;  %s684_s18 = smov [#allocation5]  }
   0xb   : > { %s939_s15 = scalar_select %p743_p4, 1, 0 }
   0xc   : > { %s940_s16 = scalar_select %p748_p6, 1, 0 }
   0xd   : > { %p753_p8 = pnand %p419_p5, %p97_p7  ;;  %s109_s19 = sshll.u32 %s684_s18, 4  ;;  %s757_s19 = int_to_ptr.vmem [resolvable:$true] %s109_s19 }
   0xe   : > { %s769_s21 = sadd.s32 1, %s682_s12   ;;  %s26_s22 = sadd.s32 1, %s678_s11 }
   0xf   : > { %s941_s17 = scalar_select %p753_p8, 1, 0 }
  0x10   : > { %p489_p9 = pneg %p753_p8  ;;  %s23_s23 = ssub.s32 %s682_s12, %s769_s21 }
  0x11   : > { %s554_s26 = scalar_lea.hbm %s934_s1, 3840 }
  0x12   : > { %p764_p11 = pnand %p489_p9, %p936_p1  ;;  %p555_p12 = scmp.ne.s32.totalorder %s934_s1, %s554_s26 }
  0x13   : > { %p561_p5 = scmp.lt.u32.totalorder %s554_s26, %s934_s1 }
  0x14   : > { %p556_p13 = pneg %p764_p11 }
  0x16   : > { %p557_p0 = pnand %p556_p13, %p555_p12 }
  0x18   : > { %p558_p3 = pneg %p557_p0 }
  0x1a   : > { %p563_p7 = pnand %p561_p5, %p558_p3 }
  0x1c   : > { %566 = shalt.err (!%p563_p7)
}
  0x1d   : > { %s567_s3 = scalar_lea.vmem %s757_s19, 3840  ;;  %p575_p2 = scmp.lt.s32.totalorder %s757_s19, %s757_s19 }
  0x1e   : > { %p568_p9 = scmp.ne.s32.totalorder %s757_s19, %s567_s3  ;;  %p576_p6 = scmp.lt.s32.totalorder %s567_s3, %s567_s3 }
  0x20   : > { %p570_p10 = pnand %p568_p9, %p556_p13  ;;  %p577_p4 = por %p576_p6, %p575_p2 }
  0x22   : > { %p571_p1 = pneg %p570_p10 }
  0x24   : > { %p578_p8 = pnand %p577_p4, %p571_p1 }
  0x26   : > { %581 = shalt.err (!%p578_p8)
}
  0x27   : > { %s685_s4 = smov 128   ;;  %s686_s5 = smov 8  }
  0x28   : > { %492 = dma.hbm_to_vmem [thread:$0]  (!%p764_p11), %s934_s1, 3840, %s757_s19, [#allocation6], %s685_s4, %s685_s4, %s686_s5  }
  0x29   : > { %p24_p2 = scmp.eq.s32.totalorder %s23_s23, 0  ;;  %p33_p1 = scmp.ne.s32.totalorder %s678_s11, %s674_s10 }
  0x2a   : > { %p34_p4 = scmp.eq.s32.totalorder %s682_s12, 0  ;;  %p502_p6 = scmp.lt.s32.totalorder %s682_s12, 2 }
  0x2b   : > { %s800_s8 = scalar_select %p24_p2, %s678_s11, %s26_s22  }
  0x2c   : > { %p35_p8 = por %p34_p4, %p33_p1  ;;  %p943_p10 = scmp.eq.s32.totalorder %s734_s13, 1 }
  0x2d   : > { %s123_s18 = sand.u32 1, %s678_s11   ;;  %s423_s24 = sshll.u32 %s682_s12, 7 }
  0x2e   : > { %p804_p12 = por %p943_p10, %p33_p1  ;;  %s422_s25 = sshll.u32 %s123_s18, 3 }
  0x2f   : > { %s813_s27 = scalar_lea.hbm %s933_s0, %s423_s24  ;;  %s127_s19 = scalar_lea.vmem [#allocation2], %s422_s25 }
  0x30   : > { %s134_s22 = sshll.u32 %s127_s19, 4  ;;  %p815_p11 = pnand %p502_p6, %p35_p8  ;;  %s819_s22 = int_to_ptr.vmem [resolvable:$true] %s134_s22 }
  0x31   : > { %s124_s28 = scalar_lea.sflag [#allocation3], %s123_s18  ;;  %s582_s29 = scalar_lea.hbm %s813_s27, 128 }
  0x32   : > { %p583_p13 = scmp.ne.s32.totalorder %s813_s27, %s582_s29  ;;  %p584_p0 = pneg %p815_p11 }
  0x33   : > { %s587_s4 = scalar_lea.hbm %s933_s0, 256  ;;  %p588_p7 = scmp.lt.u32.totalorder %s813_s27, %s933_s0 }
  0x34   : > { %p585_p3 = pnand %p584_p0, %p583_p13  ;;  %p589_p9 = scmp.lt.u32.totalorder %s587_s4, %s582_s29 }
  0x35   : > { %p591_p1 = scmp.lt.u32.totalorder %s582_s29, %s813_s27 }
  0x36   : > { %p586_p5 = pneg %p585_p3  ;;  %p590_p2 = por %p589_p9, %p588_p7 }
  0x38   : > { %p592_p4 = por %p591_p1, %p590_p2 }
  0x3a   : > { %p593_p6 = pnand %p592_p4, %p586_p5 }
  0x3c   : > { %596 = shalt.err (!%p593_p6)
}
  0x3d   : > { %s597_s7 = scalar_lea.vmem %s819_s22, 128  ;;  %s687_s18 = smov [#allocation2]  }
  0x3e   : > { %p598_p8 = scmp.ne.s32.totalorder %s819_s22, %s597_s7  ;;  %s602_s24 = sshll.u32 %s687_s18, 4  ;;  %s603_s24 = int_to_ptr.vmem [resolvable:$false] %s602_s24 }
  0x3f   : > { %s604_s25 = scalar_lea.vmem %s603_s24, 256  ;;  %p605_p3 = scmp.lt.s32.totalorder %s819_s22, %s603_s24 }
  0x40   : > { %p600_p10 = pnand %p598_p8, %p584_p0  ;;  %p606_p7 = scmp.lt.s32.totalorder %s604_s25, %s597_s7 }
  0x42   : > { %p601_p13 = pneg %p600_p10  ;;  %p607_p9 = por %p606_p7, %p605_p3 }
  0x44   : > { %p608_p2 = pnand %p607_p9, %p601_p13 }
  0x46   : > { %611 = shalt.err (!%p608_p2)
}
  0x47   : > { %496 = dma.hbm_to_vmem [thread:$0]  (!%p815_p11), %s813_s27, 128, %s819_s22, %s124_s28  }
  0x48   : > { %p946_p5 = scmp.ne.s32.totalorder %s941_s17, 0 }
  0x49   : > { %s849_s20 = sand.u32 (!%p946_p5), 1, %s674_s10   ;;  %p947_p0 = scmp.ne.s32.totalorder (!%p946_p5), %s939_s15, 0 }
  0x4a   : > { %143 = sbr.rel (%p946_p5) target bundleno = 577 (0x241), region = 28  ;;  %s425_s26 = sshll.u32 (!%p946_p5), %s849_s20, 3 }
  0x4b   : > { %s146_s19 = scalar_lea.sflag (!%p946_p5), [#allocation3], %s849_s20  ;;  %s149_s29 = scalar_lea.vmem (!%p946_p5), [#allocation2], %s425_s26 }
  0x51   : > { %657 = dma.done.wait (%p947_p0), %s146_s19, 128  }
  0x52   : > { %659 = vsyncadd (%p947_p0), %s146_s19, 4294967168  ;;  %p948_p11 = scmp.eq.s32.totalorder %s734_s13, 0 }
  0x54   : > { %661 = dma.done.wait (%p948_p11), [#allocation6], 3840   ;;  %p949_p1 = pmov %p948_p11 }
  0x55   : > { %v688_v0 = vmov 0   ;;  %v689_v1 = vmov 6   ;;  %v863_v2 = vld [vmem:[%s149_s29] sm:$0xff]  ;;  %s690_s17 = smov 127   ;;  %v219_v4 = vld [vmem:[#allocation5] sm:$0xff]  ;;  %v220_v5 = vld [vmem:[#allocation5 + $0x8] sm:$0xff]  ;;  %v175_v60 = vlaneseq }
  0x56   : > { %663 = vsyncadd (%p949_p1), [#allocation6], 4294963456  ;;  %549 = vset.pattern.permute.xlu1 %v688_v0  ;;  %551 = vset.pattern.permute.xlu0 %v689_v1  ;;  %v179_v3 = vmul.u32 2, %v863_v2  ;;  %v221_v6 = vld [vmem:[#allocation5 + $0x10] sm:$0xff]  ;;  %s691_s15 = smov 126   ;;  %v692_v7 = vmov 0.0|0.0   ;;  %v437_v8 = vpack.c.bf16 %v220_v5, %v219_v4 }
  0x57   : > { %436 = vmatprep.subr.bf16.mxu0 %v692_v7  ;;  %v222_v9 = vld [vmem:[#allocation5 + $0x18] sm:$0xff]  ;;  %v223_v11 = vld [vmem:[#allocation5 + $0x20] sm:$0xff]  ;;  %v224_v12 = vld [vmem:[#allocation5 + $0x28] sm:$0xff]  ;;  %v178_v41 = vmul.u32 12, %v863_v2  ;;  %v693_v51 = vmov 3   ;;  %v694_v55 = vmov 9  }
  0x58   : > { %180 = vrot.lane.b32.xlu0 %v179_v3, %s690_s17  ;;  %438 = vmatpush1.bf16.msra.mxu0 %v437_v8  ;;  %v440_v10 = vpack.c.bf16 %v222_v9, %v221_v6  ;;  %v443_v13 = vpack.c.bf16 %v224_v12, %v223_v11  ;;  %v225_v14 = vld [vmem:[#allocation5 + $0x30] sm:$0xff]  ;;  %v226_v15 = vld [vmem:[#allocation5 + $0x38] sm:$0xff]  ;;  %v227_v17 = vld [vmem:[#allocation5 + $0x40] sm:$0xff]  ;;  %v176_v61 = vand.u32 127, %v175_v60  ;;  %vm249_vm10 = vcmask 916480   ;;  %s173_s27 = scalar_lea.vmem [#allocation7], %s425_s26 }
  0x59   : > { %439 = vmatprep.subr.bf16.mxu0 %v692_v7  ;;  %v446_v16 = vpack.c.bf16 %v226_v15, %v225_v14  ;;  %v228_v18 = vld [vmem:[#allocation5 + $0x48] sm:$0xff]  ;;  %v229_v20 = vld [vmem:[#allocation5 + $0x50] sm:$0xff]  ;;  %v230_v21 = vld [vmem:[#allocation5 + $0x58] sm:$0xff]  ;;  %v695_v3 = vmov 0.0   ;;  %v696_v5 = vmov 1.0   ;;  %s338_s22 = sshll.u32 %s173_s27, 4  ;;  %s886_s22 = int_to_ptr.vmem [resolvable:$true] %s338_s22 }
  0x5a   : > { %v449_v19 = vpack.c.bf16 %v228_v18, %v227_v17  ;;  %v452_v22 = vpack.c.bf16 %v230_v21, %v229_v20  ;;  %v231_v23 = vld [vmem:[#allocation5 + $0x60] sm:$0xff]  ;;  %v232_v24 = vld [vmem:[#allocation5 + $0x68] sm:$0xff]  ;;  %v233_v26 = vld [vmem:[#allocation5 + $0x70] sm:$0xff]  ;;  %v177_v63 = vadd.s32 128, %v176_v61  ;;  %s433_s23 = sshll.u32 %s734_s13, 7  ;;  %s325_s4 = scalar_lea.sflag [#allocation4], %s849_s20 }
  0x5b   : > { %v455_v25 = vpack.c.bf16 %v232_v24, %v231_v23  ;;  %v234_v27 = vld [vmem:[#allocation5 + $0x78] sm:$0xff]  ;;  %v235_v29 = vld [vmem:[#allocation5 + $0x80] sm:$0xff]  ;;  %v236_v30 = vld [vmem:[#allocation5 + $0x88] sm:$0xff]  ;;  %s891_s3 = scalar_lea.hbm %s935_s2, %s433_s23  ;;  %s612_s5 = scalar_lea.vmem %s886_s22, 128 }
  0x5c   : > { %183 = vrot.lane.b32.xlu0 %v863_v2, %s691_s15  ;;  %441 = vmatpush1.bf16.msra.mxu0 %v440_v10  ;;  %v458_v28 = vpack.c.bf16 %v234_v27, %v233_v26  ;;  %v461_v31 = vpack.c.bf16 %v236_v30, %v235_v29  ;;  %v237_v32 = vld [vmem:[#allocation5 + $0x90] sm:$0xff]  ;;  %v238_v33 = vld [vmem:[#allocation5 + $0x98] sm:$0xff]  ;;  %v239_v35 = vld [vmem:[#allocation5 + $0xa0] sm:$0xff]  ;;  %p613_p4 = scmp.ne.s32.totalorder %s886_s22, %s612_s5  ;;  %s697_s13 = smov [#allocation7]  }
  0x5d   : > { %442 = vmatprep.subr.bf16.mxu0 %v692_v7  ;;  %v464_v34 = vpack.c.bf16 %v238_v33, %v237_v32  ;;  %v240_v36 = vld [vmem:[#allocation5 + $0xa8] sm:$0xff]  ;;  %v241_v38 = vld [vmem:[#allocation5 + $0xb0] sm:$0xff]  ;;  %v242_v39 = vld [vmem:[#allocation5 + $0xb8] sm:$0xff]  ;;  %s616_s6 = sshll.u32 %s697_s13, 4  ;;  %s617_s6 = int_to_ptr.vmem [resolvable:$false] %s616_s6 }
  0x5e   : > { %v467_v37 = vpack.c.bf16 %v240_v36, %v239_v35  ;;  %v470_v40 = vpack.c.bf16 %v242_v39, %v241_v38  ;;  %v243_v47 = vld [vmem:[#allocation5 + $0xc0] sm:$0xff]  ;;  %v244_v48 = vld [vmem:[#allocation5 + $0xc8] sm:$0xff]  ;;  %v245_v52 = vld [vmem:[#allocation5 + $0xd0] sm:$0xff]  ;;  %p614_p6 = pnand %p613_p4, %p804_p12  ;;  %s618_s7 = scalar_lea.vmem %s617_s6, 256 }
  0x5f   : > { %v473_v49 = vpack.c.bf16 %v244_v48, %v243_v47  ;;  %v246_v53 = vld [vmem:[#allocation5 + $0xd8] sm:$0xff]  ;;  %v247_v57 = vld [vmem:[#allocation5 + $0xe0] sm:$0xff]  ;;  %v248_v58 = vld [vmem:[#allocation5 + $0xe8] sm:$0xff]  ;;  %p619_p10 = scmp.lt.s32.totalorder %s886_s22, %s617_s6  ;;  %p620_p13 = scmp.lt.s32.totalorder %s618_s7, %s612_s5 }
  0x60   : > { %444 = vmatpush1.bf16.msra.mxu0 %v443_v13  ;;  %v476_v54 = vpack.c.bf16 %v246_v53, %v245_v52  ;;  %v479_v59 = vpack.c.bf16 %v248_v58, %v247_v57  ;;  %p615_p8 = pneg %p614_p6 }
  0x61   : > { %445 = vmatprep.subr.bf16.mxu0 %v692_v7  ;;  %p621_p3 = por %p620_p13, %p619_p10 }
  0x63   : > { %p622_p7 = pnand %p621_p3, %p615_p8 }
  0x64   : > { %447 = vmatpush1.bf16.msra.mxu0 %v446_v16 }
  0x65   : > { %448 = vmatprep.subr.bf16.mxu0 %v692_v7 }
  0x68   : > { %450 = vmatpush1.bf16.msra.mxu0 %v449_v19 }
  0x69   : > { %451 = vmatprep.subr.bf16.mxu0 %v692_v7 }
  0x6c   : > { %453 = vmatpush1.bf16.msra.mxu0 %v452_v22 }
  0x6d   : > { %454 = vmatprep.subr.bf16.mxu0 %v692_v7 }
  0x70   : > { %456 = vmatpush1.bf16.msra.mxu0 %v455_v25 }
  0x71   : > { %457 = vmatprep.subr.bf16.mxu0 %v692_v7 }
  0x74   : > { %459 = vmatpush1.bf16.msra.mxu0 %v458_v28 }
  0x75   : > { %460 = vmatprep.subr.bf16.mxu0 %v692_v7 }
  0x78   : > { %462 = vmatpush1.bf16.msra.mxu0 %v461_v31 }
  0x79   : > { %463 = vmatprep.subr.bf16.mxu0 %v692_v7 }
  0x7c   : > { %465 = vmatpush1.bf16.msra.mxu0 %v464_v34 }
  0x7d   : > { %466 = vmatprep.subr.bf16.mxu0 %v692_v7 }
  0x80   : > { %468 = vmatpush1.bf16.msra.mxu0 %v467_v37 }
  0x81   : > { %469 = vmatprep.subr.bf16.mxu0 %v692_v7 }
  0x84   : > { %471 = vmatpush1.bf16.msra.mxu0 %v470_v40 }
  0x85   : > { %472 = vmatprep.subr.bf16.mxu0 %v692_v7 }
  0x88   : > { %474 = vmatpush1.bf16.msra.mxu0 %v473_v49 }
  0x89   : > { %475 = vmatprep.subr.bf16.mxu0 %v692_v7 }
  0x8c   : > { %477 = vmatpush1.bf16.msra.mxu0 %v476_v54 }
  0x8d   : > { %478 = vmatprep.subr.bf16.mxu0 %v692_v7 }
  0x90   : > { %480 = vmatpush1.bf16.msra.mxu0 %v479_v59 }
  0xca   : > { %v181_v42 = vpop.permute.xlu0 %180 }
  0xcb   : > { %v182_v43 = vadd.s32 %v181_v42, %v178_v41 }
  0xce   : > { %v184_v44 = vpop.permute.xlu0 %183 }
  0xcf   : > { %v185_v45 = vadd.s32 %v184_v44, %v182_v43 }
  0xd1   : > { %187 = vperm.xlu1 %549, %v185_v45   ;;  %v199_v46 = vadd.s32 120, %v185_v45  ;;  %v191_v50 = vadd.s32 60, %v185_v45  ;;  %v207_v56 = vadd.s32 180, %v185_v45 }
  0xd3   : > { %201 = vperm.xlu0 %551, %v199_v46  }
  0xd5   : > { %550 = vset.pattern.permute.xlu1 %v693_v51 }
  0xd6   : > { %193 = vperm.xlu1 %550, %v191_v50  }
  0xd7   : > { %553 = vset.pattern.permute.xlu0 %v694_v55 }
  0xda   : > { %552 = vset.pattern.permute.xlu1 %v694_v55 }
  0xdb   : > { %209 = vperm.xlu1 %552, %v207_v56  }
 0x150   : > { %v188_v62 = vpop.permute.xlu1 %187 }
 0x151   : > { %vm190_vm1 = vcmp.eq.s32.totalorder %v188_v62, %v177_v63  ;;  %vm189_vm4 = vcmp.eq.s32.totalorder %v188_v62, %v176_v61 }
 0x152   : > { %v202_v1 = vpop.permute.xlu0 %201 }
 0x153   : > { %vm204_vm5 = vcmp.eq.s32.totalorder %v202_v1, %v177_v63  ;;  %vm203_vm11 = vcmp.eq.s32.totalorder %v202_v1, %v176_v61 }
 0x155   : > { %v194_v0 = vpop.permute.xlu1 %193 }
 0x156   : > { %vm196_vm0 = vcmp.eq.s32.totalorder %v194_v0, %v177_v63  ;;  %vm195_vm2 = vcmp.eq.s32.totalorder %v194_v0, %v176_v61 }
 0x157   : > { %vm198_vm3 = vmor %vm190_vm1, %vm196_vm0 }
 0x158   : > { %vm197_vm6 = vmor %vm189_vm4, %vm195_vm2 }
 0x159   : > { %vm206_vm9 = vmor %vm198_vm3, %vm204_vm5 }
 0x15a   : > { %v210_v2 = vpop.permute.xlu1 %209  ;;  %vm205_vm13 = vmor %vm197_vm6, %vm203_vm11 }
 0x15b   : > { %vm212_vm7 = vcmp.eq.s32.totalorder %v210_v2, %v177_v63  ;;  %vm211_vm8 = vcmp.eq.s32.totalorder %v210_v2, %v176_v61 }
 0x15c   : > { %vm214_vm12 = vmor %vm206_vm9, %vm212_vm7 }
 0x15d   : > { %v429_v4 = vsel %vm214_vm12, 1.0, %v695_v3  ;;  %vm213_vm14 = vmor %vm205_vm13, %vm211_vm8 }
 0x15e   : > { %430 = vmatprep.mubr.msk.f32.mxu0 %vm249_vm10, %v429_v4 }
 0x15f   : > { %431 = vmatmul.mubr.msk.f32.vlgmr.msra.gmra.mrb[0].mxu0 %vm213_vm14, %v696_v5 }
 0x232   : > { %v319_v6 = vpop.f32.mrb[0].mxu0 }
 0x233   : > { %323 = vst [vmem:[%s173_s27] sm:$0xff] %v319_v6  ;;  %v321_v7 = vpop.f32.mrb[1].mxu0 }
 0x234   : > { %625 = shalt.err (!%p622_p7)
}
 0x235   : > { %s626_s18 = scalar_lea.hbm %s891_s3, 128  ;;  %s630_s20 = scalar_lea.hbm %s935_s2, 256 }
 0x236   : > { %p627_p9 = scmp.ne.s32.totalorder %s891_s3, %s626_s18  ;;  %p631_p0 = scmp.lt.u32.totalorder %s891_s3, %s935_s2 }
 0x237   : > { %p632_p11 = scmp.lt.u32.totalorder %s630_s20, %s626_s18  ;;  %p634_p4 = scmp.lt.u32.totalorder %s626_s18, %s891_s3 }
 0x238   : > { %p628_p2 = pnand %p627_p9, %p804_p12 }
 0x239   : > { %p633_p1 = por %p632_p11, %p631_p0 }
 0x23a   : > { %p629_p5 = pneg %p628_p2 }
 0x23b   : > { %p635_p6 = por %p634_p4, %p633_p1 }
 0x23d   : > { %p636_p8 = pnand %p635_p6, %p629_p5 }
 0x23f   : > { %639 = shalt.err (!%p636_p8)
}
 0x240   : > { %487 = dma.vmem_to_hbm [thread:$0]  (%p804_p12), %s886_s22, 128, %s891_s3, %s325_s4  }
 0x241 PF: > { %s350_s29 = sand.u32 1, %s670_s9   ;;  %p950_p10 = scmp.ne.s32.totalorder %s940_s16, 0 }
 0x242   : > { %p951_p13 = scmp.ge.s32.totalorder %s682_s12, 2  ;;  %s351_s17 = scalar_lea.sflag [#allocation4], %s350_s29 }
 0x244   : > { %p498_p3 = pnand %p951_p13, %p950_p10 }
 0x246   : > { %665 = dma.done.wait (!%p498_p3), %s351_s17, 128  }
 0x247   : > { %667 = vsyncadd (!%p498_p3), %s351_s17, 4294967168  ;;  %p16_p7 = scmp.ge.s32.totalorder %s769_s21, 4   ;;  %s952_s9 = smov %s674_s10 }
 0x248   : > { %s953_s10 = smov %s678_s11  ;;  %s954_s11 = smov %s800_s8 }
 0x249   : > { %s955_s12 = smov %s769_s21  ;;  %18 = sbr.rel (!%p16_p7) target bundleno = 6 (0x6), region = 77 }
 0x250   :  { %356 = vsyncpa [#allocation3], 1 }
 0x251   :  { %358 = vsyncpa [#allocation3 + $0x1], 1 }
 0x252   :  { %359 = vsyncpa [#allocation6], 1 }
 0x253   :  { %360 = vsyncpa [#allocation4], 1 }
 0x254   :  { %362 = vsyncpa [#allocation4 + $0x1], 1 }

</bundles_post_ra>
